<compile_context>
chip_gen: v7x
topology: tpu7x:2x2x1
jax: 0.10.0
libtpu: 0.0.40
codegen_flags: <defaults>
</compile_context>

<pallas_src>
import functools

import jax
import jax.numpy as jnp
from jax.experimental import pallas as pl
from jax.experimental.pallas import tpu as pltpu

_HIDDEN = 50        # logical hidden width of the torch module
_HIDDEN_PAD = 64    # sublane-aligned padded hidden width
_LANES = 128        # lane width; head weight padded to a multiple of this


def _round_up(x, m):
    return (x + m - 1) // m * m


def _pad2(a, rows, cols):
    return jnp.pad(a, ((0, rows - a.shape[0]), (0, cols - a.shape[1])))


def _discrete_kernel(x_ref, w1_ref, b1_ref, w2_ref, b2_ref, wd_ref, bd_ref,
                     o_ref, *, a_valid):
    # fc1 + tanh, fc2 + tanh  (MXU matmuls, f32 accumulate, f32 tanh on EUP)
    h = jnp.tanh(jnp.dot(x_ref[...], w1_ref[...],
                         preferred_element_type=jnp.float32) + b1_ref[...])
    h = jnp.tanh(jnp.dot(h.astype(w2_ref.dtype), w2_ref[...],
                         preferred_element_type=jnp.float32) + b2_ref[...])
    # Head matmul on the lane-padded weight, then slice to the valid A columns
    # BEFORE the softmax so the exp/log reductions and the HBM store are narrow.
    logits = (jnp.dot(h.astype(wd_ref.dtype), wd_ref[...],
                      preferred_element_type=jnp.float32)
              + bd_ref[...])[:, :a_valid]
    m = jnp.max(logits, axis=-1, keepdims=True)
    lse = m + jnp.log(jnp.sum(jnp.exp(logits - m), axis=-1, keepdims=True))
    o_ref[...] = (logits - lse).astype(o_ref.dtype)


def _continuous_kernel(x_ref, w1_ref, b1_ref, w2_ref, b2_ref, w3_ref, b3_ref,
                       wc_ref, bc_ref, o_ref, *, a_valid):
    h = jnp.tanh(jnp.dot(x_ref[...], w1_ref[...],
                         preferred_element_type=jnp.float32) + b1_ref[...])
    h = jnp.tanh(jnp.dot(h.astype(w2_ref.dtype), w2_ref[...],
                         preferred_element_type=jnp.float32) + b2_ref[...])
    h = jnp.tanh(jnp.dot(h.astype(w3_ref.dtype), w3_ref[...],
                         preferred_element_type=jnp.float32) + b3_ref[...])
    out = (jnp.dot(h.astype(wc_ref.dtype), wc_ref[...],
                   preferred_element_type=jnp.float32)
           + bc_ref[...])[:, :a_valid]
    o_ref[...] = out.astype(o_ref.dtype)


@functools.partial(jax.jit, static_argnames=("discrete", "compute_dtype"))
def generator_forward(x, params, *, discrete, compute_dtype=jnp.float32):
    """Run the whole MLP in a single batch-tiled Pallas kernel.

    params: dict with w1,b1,w2,b2,w3,b3 and (wd,bd)/(wc,bc) heads in natural
            (unpadded) shapes; weights are (in_features, out_features),
            biases are (out_features,).
    compute_dtype: jnp.float32 (exact vs torch) or jnp.bfloat16 (halves input
            DMA; MXU-only bf16, so safe on v5e/v6e/v7x, but drifts past 1e-5).
    """
    B, Din = x.shape
    if discrete:
        w_head, b_head = params["wd"], params["bd"]
    else:
        w_head, b_head = params["wc"], params["bc"]
    A = w_head.shape[1]

    Hp = _HIDDEN_PAD
    Ap = _round_up(max(A, 1), _LANES)      # lane-padded head for the MXU only
    cd = jnp.dtype(compute_dtype)
    itemsize = cd.itemsize

    # --- pad parameters to hardware-friendly shapes (weights are tiny) ------
    w1 = _pad2(params["w1"], Din, Hp).astype(cd)
    b1 = _pad2(params["b1"].reshape(1, -1), 1, Hp).astype(jnp.float32)
    w2 = _pad2(params["w2"], Hp, Hp).astype(cd)
    b2 = _pad2(params["b2"].reshape(1, -1), 1, Hp).astype(jnp.float32)
    wh = _pad2(w_head, Hp, Ap).astype(cd)
    bh = _pad2(b_head.reshape(1, -1), 1, Ap).astype(jnp.float32)

    # --- batch tiling -------------------------------------------------------
    B8 = _round_up(max(B, 1), 8)
    # Big tiles amortize the ~0.35 us per-grid-step overhead; budget keeps the
    # double-buffered x + out streaming tiles well inside scoped VMEM.
    bytes_per_row = Din * itemsize + A * 4
    budget = 12 * 1024 * 1024              # one set of streaming tiles
    tm_target = max(256, min(8192, (budget // max(bytes_per_row, 1)) // 8 * 8))
    # Keep >= 2 grid steps when possible so v7x's two TensorCores both work.
    TM = min(tm_target, _round_up(-(-B8 // 2), 8))
    TM = max(TM, 8)
    Bp = _round_up(B8, TM)

    x_c = x.astype(cd)
    if Bp != B:
        x_c = jnp.pad(x_c, ((0, Bp - B), (0, 0)))
    grid = (Bp // TM,)

    batch_map = lambda i: (i, 0)      # activation / output tiles walk the batch
    const_map = lambda i: (0, 0)      # weights stay resident in VMEM

    in_specs = [
        pl.BlockSpec((TM, Din), batch_map),
        pl.BlockSpec((Din, Hp), const_map),
        pl.BlockSpec((1, Hp), const_map),
        pl.BlockSpec((Hp, Hp), const_map),
        pl.BlockSpec((1, Hp), const_map),
    ]
    operands = [x_c, w1, b1, w2, b2]

    if discrete:
        kernel = functools.partial(_discrete_kernel, a_valid=A)
        flops = 2 * Bp * (Din * Hp + Hp * Hp + Hp * Ap)
        transcendentals = Bp * (2 * Hp + A + 1)
    else:
        w3 = _pad2(params["w3"], Hp, Hp).astype(cd)
        b3 = _pad2(params["b3"].reshape(1, -1), 1, Hp).astype(jnp.float32)
        in_specs += [pl.BlockSpec((Hp, Hp), const_map),
                     pl.BlockSpec((1, Hp), const_map)]
        operands += [w3, b3]
        kernel = functools.partial(_continuous_kernel, a_valid=A)
        flops = 2 * Bp * (Din * Hp + 2 * Hp * Hp + Hp * Ap)
        transcendentals = Bp * 3 * Hp

    in_specs += [pl.BlockSpec((Hp, Ap), const_map),
                 pl.BlockSpec((1, Ap), const_map)]
    operands += [wh, bh]

    weight_bytes = sum(int(o.size) * o.dtype.itemsize for o in operands[1:])
    bytes_accessed = (int(x_c.size) * itemsize + weight_bytes + Bp * A * 4)

    # Explicit scoped-VMEM limit: >= 32 MiB (so v5e's 16 MiB default never
    # blocks the large tiles), <= 48 MiB (safe margin under v7x's 64 MiB).
    x_tile_bytes = TM * Din * itemsize
    out_tile_bytes = TM * A * 4
    vmem_limit = int(min(48 * 2**20,
                         max(32 * 2**20,
                             2 * (x_tile_bytes + out_tile_bytes)
                             + 2 * weight_bytes + 4 * 2**20)))

    out_pad = pl.pallas_call(
        kernel,
        out_shape=jax.ShapeDtypeStruct((Bp, A), jnp.float32),
        grid=grid,
        in_specs=in_specs,
        out_specs=pl.BlockSpec((TM, A), batch_map),
        compiler_params=pltpu.CompilerParams(
            dimension_semantics=("parallel",),
            vmem_limit_bytes=vmem_limit),
        cost_estimate=pl.CostEstimate(
            flops=int(flops),
            transcendentals=int(transcendentals),
            bytes_accessed=int(bytes_accessed)),
    )(*operands)

    return out_pad[:B]


def _reference_forward(x, params, *, discrete):
    h = jnp.tanh(x @ params["w1"] + params["b1"])
    h = jnp.tanh(h @ params["w2"] + params["b2"])
    if discrete:
        logits = h @ params["wd"] + params["bd"]
        return jax.nn.log_softmax(logits, axis=-1)
    h = jnp.tanh(h @ params["w3"] + params["b3"])
    return h @ params["wc"] + params["bc"]


def make_params(key, input_dim, action_space_dim, hidden=_HIDDEN):
    ks = jax.random.split(key, 10)

    def lin(kw, kb, fan_in, fan_out):
        # Deterministic synthetic init (uniform, torch-Linear-like scale).
        bound = 1.0 / jnp.sqrt(fan_in)
        w = jax.random.uniform(kw, (fan_in, fan_out), jnp.float32, -bound, bound)
        b = jax.random.uniform(kb, (fan_out,), jnp.float32, -bound, bound)
        return w, b

    w1, b1 = lin(ks[0], ks[1], input_dim, hidden)
    w2, b2 = lin(ks[2], ks[3], hidden, hidden)
    w3, b3 = lin(ks[4], ks[5], hidden, hidden)
    wd, bd = lin(ks[6], ks[7], hidden, action_space_dim)
    wc, bc = lin(ks[8], ks[9], hidden, action_space_dim)
    return {"w1": w1, "b1": b1, "w2": w2, "b2": b2, "w3": w3, "b3": b3,
            "wd": wd, "bd": bd, "wc": wc, "bc": bc,
            # TODO(synk): log_std is a parameter of the torch module (cts case)
            # but does not participate in the forward pass, so it is unused here.
            "log_std": jnp.zeros((action_space_dim,), jnp.float32)}


if __name__ == "__main__":
    key = jax.random.PRNGKey(0)
    k_x, k_p, k_x2 = jax.random.split(key, 3)

    B, input_dim, action_space_dim = 8, 32, 4
    x = jax.random.normal(k_x, (B, input_dim), jnp.float32)
    params = make_params(k_p, input_dim, action_space_dim)

    # Discrete head (log-softmax policy logits)
    out_d = jax.block_until_ready(generator_forward(x, params, discrete=True))
    ref_d = _reference_forward(x, params, discrete=True)
    assert out_d.shape == (B, action_space_dim)
    assert jnp.allclose(out_d, ref_d, atol=1e-5, rtol=1e-5)

    # Continuous head (action means)
    out_c = jax.block_until_ready(generator_forward(x, params, discrete=False))
    ref_c = _reference_forward(x, params, discrete=False)
    assert out_c.shape == (B, action_space_dim)
    assert jnp.allclose(out_c, ref_c, atol=1e-5, rtol=1e-5)

    # Larger, non-aligned batch exercises the >=2-step batch grid + padding.
    B2 = 300
    x2 = jax.random.normal(k_x2, (B2, input_dim), jnp.float32)
    out2d = jax.block_until_ready(generator_forward(x2, params, discrete=True))
    ref2d = _reference_forward(x2, params, discrete=True)
    assert out2d.shape == (B2, action_space_dim)
    assert jnp.allclose(out2d, ref2d, atol=1e-5, rtol=1e-5)

    out2c = jax.block_until_ready(generator_forward(x2, params, discrete=False))
    ref2c = _reference_forward(x2, params, discrete=False)
    assert out2c.shape == (B2, action_space_dim)
    assert jnp.allclose(out2c, ref2c, atol=1e-5, rtol=1e-5)

    print("KERNEL_OK")
</pallas_src>

<mosaic_0001>
module attributes {stable_mosaic.version = 11 : i64} {
  func.func @_discrete_kernel(%arg0: i32, %arg1: memref<8x32xf32, #tpu.memory_space<vmem>>, %arg2: memref<32x64xf32, #tpu.memory_space<vmem>>, %arg3: memref<1x64xf32, #tpu.memory_space<vmem>>, %arg4: memref<64x64xf32, #tpu.memory_space<vmem>>, %arg5: memref<1x64xf32, #tpu.memory_space<vmem>>, %arg6: memref<64x128xf32, #tpu.memory_space<vmem>>, %arg7: memref<1x128xf32, #tpu.memory_space<vmem>>, %arg8: memref<8x4xf32, #tpu.memory_space<vmem>>) attributes {dimension_semantics = [#tpu.dimension_semantics<parallel>], iteration_bounds = array<i64: 1>, scalar_prefetch = 0 : i64, scratch_operands = 0 : i64, tpu.core_type = #tpu.core_type<tc>, window_params = [{transform_indices = @transform_0, window_bounds = array<i64: 8, 32>}, {pipeline_mode = #tpu.pipeline_mode<synchronous>, transform_indices = @transform_1, window_bounds = array<i64: 32, 64>}, {pipeline_mode = #tpu.pipeline_mode<synchronous>, transform_indices = @transform_2, window_bounds = array<i64: 1, 64>}, {pipeline_mode = #tpu.pipeline_mode<synchronous>, transform_indices = @transform_3, window_bounds = array<i64: 64, 64>}, {pipeline_mode = #tpu.pipeline_mode<synchronous>, transform_indices = @transform_4, window_bounds = array<i64: 1, 64>}, {pipeline_mode = #tpu.pipeline_mode<synchronous>, transform_indices = @transform_5, window_bounds = array<i64: 64, 128>}, {pipeline_mode = #tpu.pipeline_mode<synchronous>, transform_indices = @transform_6, window_bounds = array<i64: 1, 128>}, {transform_indices = @transform_7, window_bounds = array<i64: 8, 4>}]} {
    %c0 = arith.constant 0 : index
    %c0_0 = arith.constant 0 : index
    %0 = vector.load %arg1[%c0, %c0_0] : memref<8x32xf32, #tpu.memory_space<vmem>>, vector<8x32xf32>
    %c0_1 = arith.constant 0 : index
    %c0_2 = arith.constant 0 : index
    %1 = vector.load %arg2[%c0_1, %c0_2] : memref<32x64xf32, #tpu.memory_space<vmem>>, vector<32x64xf32>
    %cst = arith.constant dense<0.000000e+00> : vector<8x64xf32>
    %2 = tpu.matmul %0, %1, %cst {dimension_numbers = #tpu.dot_dimension_numbers<[1], [0], [0], [1], [0, 0, 1, 1], [], []>} : vector<8x32xf32>, vector<32x64xf32>, vector<8x64xf32> -> vector<8x64xf32>
    %c0_3 = arith.constant 0 : index
    %c0_4 = arith.constant 0 : index
    %3 = vector.load %arg3[%c0_3, %c0_4] : memref<1x64xf32, #tpu.memory_space<vmem>>, vector<1x64xf32>
    %4 = vector.broadcast %3 : vector<1x64xf32> to vector<8x64xf32>
    %5 = arith.addf %2, %4 : vector<8x64xf32>
    %6 = math.tanh %5 : vector<8x64xf32>
    %c0_5 = arith.constant 0 : index
    %c0_6 = arith.constant 0 : index
    %7 = vector.load %arg4[%c0_5, %c0_6] : memref<64x64xf32, #tpu.memory_space<vmem>>, vector<64x64xf32>
    %cst_7 = arith.constant dense<0.000000e+00> : vector<8x64xf32>
    %8 = tpu.matmul %6, %7, %cst_7 {dimension_numbers = #tpu.dot_dimension_numbers<[1], [0], [0], [1], [0, 0, 1, 1], [], []>} : vector<8x64xf32>, vector<64x64xf32>, vector<8x64xf32> -> vector<8x64xf32>
    %c0_8 = arith.constant 0 : index
    %c0_9 = arith.constant 0 : index
    %9 = vector.load %arg5[%c0_8, %c0_9] : memref<1x64xf32, #tpu.memory_space<vmem>>, vector<1x64xf32>
    %10 = vector.broadcast %9 : vector<1x64xf32> to vector<8x64xf32>
    %11 = arith.addf %8, %10 : vector<8x64xf32>
    %12 = math.tanh %11 : vector<8x64xf32>
    %c0_10 = arith.constant 0 : index
    %c0_11 = arith.constant 0 : index
    %13 = vector.load %arg6[%c0_10, %c0_11] : memref<64x128xf32, #tpu.memory_space<vmem>>, vector<64x128xf32>
    %cst_12 = arith.constant dense<0.000000e+00> : vector<8x128xf32>
    %14 = tpu.matmul %12, %13, %cst_12 {dimension_numbers = #tpu.dot_dimension_numbers<[1], [0], [0], [1], [0, 0, 1, 1], [], []>} : vector<8x64xf32>, vector<64x128xf32>, vector<8x128xf32> -> vector<8x128xf32>
    %c0_13 = arith.constant 0 : index
    %c0_14 = arith.constant 0 : index
    %15 = vector.load %arg7[%c0_13, %c0_14] : memref<1x128xf32, #tpu.memory_space<vmem>>, vector<1x128xf32>
    %16 = vector.broadcast %15 : vector<1x128xf32> to vector<8x128xf32>
    %17 = arith.addf %14, %16 : vector<8x128xf32>
    %18 = vector.extract_strided_slice %17 {offsets = [0, 0], sizes = [8, 4], strides = [1, 1]} : vector<8x128xf32> to vector<8x4xf32>
    %cst_15 = arith.constant dense<0xFF800000> : vector<8xf32>
    %19 = vector.multi_reduction <maximumf>, %18, %cst_15 [1] : vector<8x4xf32> to vector<8xf32>
    %20 = vector.shape_cast %19 : vector<8xf32> to vector<8x1xf32>
    %21 = vector.broadcast %20 : vector<8x1xf32> to vector<8x4xf32>
    %22 = arith.subf %18, %21 : vector<8x4xf32>
    %23 = math.exp %22 : vector<8x4xf32>
    %cst_16 = arith.constant dense<0.000000e+00> : vector<8xf32>
    %24 = vector.multi_reduction <add>, %23, %cst_16 [1] : vector<8x4xf32> to vector<8xf32>
    %25 = vector.shape_cast %24 : vector<8xf32> to vector<8x1xf32>
    %26 = math.log %25 : vector<8x1xf32>
    %27 = arith.addf %20, %26 : vector<8x1xf32>
    %28 = vector.broadcast %27 : vector<8x1xf32> to vector<8x4xf32>
    %29 = arith.subf %18, %28 : vector<8x4xf32>
    %c0_17 = arith.constant 0 : index
    %c0_18 = arith.constant 0 : index
    %30 = vector.load %arg8[%c0_17, %c0_18] : memref<8x4xf32, #tpu.memory_space<vmem>>, vector<8x4xf32>
    tpu.vector_store %arg8[%c0_17, %c0_18], %29 {strides = array<i32>} : memref<8x4xf32, #tpu.memory_space<vmem>>, vector<8x4xf32>,
    return
  }
  func.func @transform_0(%arg0: i32) -> (i32, i32) {
    %c0_i32 = arith.constant 0 : i32
    %c0_i32_0 = arith.constant 0 : i32
    return %arg0, %c0_i32 : i32, i32
  }
  func.func @transform_1(%arg0: i32) -> (i32, i32) {
    %c0_i32 = arith.constant 0 : i32
    %c0_i32_0 = arith.constant 0 : i32
    %c0_i32_1 = arith.constant 0 : i32
    return %c0_i32, %c0_i32_0 : i32, i32
  }
  func.func @transform_2(%arg0: i32) -> (i32, i32) {
    %c0_i32 = arith.constant 0 : i32
    %c0_i32_0 = arith.constant 0 : i32
    %c0_i32_1 = arith.constant 0 : i32
    return %c0_i32, %c0_i32_0 : i32, i32
  }
  func.func @transform_3(%arg0: i32) -> (i32, i32) {
    %c0_i32 = arith.constant 0 : i32
    %c0_i32_0 = arith.constant 0 : i32
    %c0_i32_1 = arith.constant 0 : i32
    return %c0_i32, %c0_i32_0 : i32, i32
  }
  func.func @transform_4(%arg0: i32) -> (i32, i32) {
    %c0_i32 = arith.constant 0 : i32
    %c0_i32_0 = arith.constant 0 : i32
    %c0_i32_1 = arith.constant 0 : i32
    return %c0_i32, %c0_i32_0 : i32, i32
  }
  func.func @transform_5(%arg0: i32) -> (i32, i32) {
    %c0_i32 = arith.constant 0 : i32
    %c0_i32_0 = arith.constant 0 : i32
    %c0_i32_1 = arith.constant 0 : i32
    return %c0_i32, %c0_i32_0 : i32, i32
  }
  func.func @transform_6(%arg0: i32) -> (i32, i32) {
    %c0_i32 = arith.constant 0 : i32
    %c0_i32_0 = arith.constant 0 : i32
    %c0_i32_1 = arith.constant 0 : i32
    return %c0_i32, %c0_i32_0 : i32, i32
  }
  func.func @transform_7(%arg0: i32) -> (i32, i32) {
    %c0_i32 = arith.constant 0 : i32
    %c0_i32_0 = arith.constant 0 : i32
    return %arg0, %c0_i32 : i32, i32
  }
}

</mosaic_0001>

<bundles_post_ra>
// kernel: generator_forward.1
= control target key start
LH: loop header
LB: loop body
LE: loop exit
PB: predicated region body
PF: predicated region fallthrough
CT: control target
= control target key end

     0   :  { %v429_v0 = vmov 0.0|0.0   ;;  %vm430_vm0 = vmmov 0   ;;  %v431_v4 = vmov 0.0   ;;  %vm38_vm1 = vcmask 261120   ;;  %s565_s1 = inlined_call_operand.vmem [shape: f32[32,64], index: 1, kind: input, shape index: {}]   ;;  %s566_s3 = inlined_call_operand.vmem [shape: f32[64,64], index: 3, kind: input, shape index: {}]   ;;  %s567_s0 = inlined_call_operand.vmem [shape: f32[8,32], index: 0, kind: input, shape index: {}]   ;;  %s568_s5 = inlined_call_operand.vmem [shape: f32[64,128], index: 5, kind: input, shape index: {}]   ;;  %s569_s2 = inlined_call_operand.vmem [shape: f32[1,64], index: 2, kind: input, shape index: {}]   ;;  %s570_s4 = inlined_call_operand.vmem [shape: f32[1,64], index: 4, kind: input, shape index: {}]   ;;  %s571_s6 = inlined_call_operand.vmem [shape: f32[1,128], index: 6, kind: input, shape index: {}]   ;;  %s572_s7 = inlined_call_operand.vmem [shape: f32[8,4], index: 7, kind: output, shape index: {}]  }
   0x1   :  { %388 = vmatprep.subr.bf16.mxu0 %v429_v0  ;;  %v27_v1 = vld [vmem:[%s565_s1] sm:$0xff]  ;;  %v28_v2 = vld [vmem:[%s565_s1 + $0x8] sm:$0xff]  ;;  %v29_v3 = vld [vmem:[%s565_s1 + $0x10] sm:$0xff]  ;;  %347 = vmatprep.mubr.msk.f32.mxu0 %vm430_vm0, %v431_v4  ;;  %vm128_vm2 = vcmask 523264   ;;  %vm291_vm3 = vcmask 31744  }
   0x2   :  { %v389_v5 = vpack.c.bf16 %v28_v2, %v27_v1  ;;  %v30_v6 = vld [vmem:[%s565_s1 + $0x18] sm:$0xff]  ;;  %394 = vmatprep.subr.bf16.mxu1 %v429_v0  ;;  %v113_v7 = vld [vmem:[%s566_s3] sm:$0xff]  ;;  %366 = vmatprep.mubr.msk.f32.mxu1 %vm430_vm0, %v431_v4  ;;  %v114_v8 = vld [vmem:[%s566_s3 + $0x8] sm:$0xff] }
   0x3   :  { %v392_v9 = vpack.c.bf16 %v30_v6, %v29_v3  ;;  %v395_v10 = vpack.c.bf16 %v114_v8, %v113_v7  ;;  %v26_v11 = vld [vmem:[%s567_s0] sm:$0xff]  ;;  %v115_v12 = vld [vmem:[%s566_s3 + $0x10] sm:$0xff]  ;;  %v116_v13 = vld [vmem:[%s566_s3 + $0x18] sm:$0xff] }
   0x4   :  { %390 = vmatpush3.bf16.msra.mxu0 %v389_v5  ;;  %v398_v14 = vpack.c.bf16 %v116_v13, %v115_v12  ;;  %v117_v15 = vld [vmem:[%s566_s3 + $0x20] sm:$0xff]  ;;  %v118_v16 = vld [vmem:[%s566_s3 + $0x28] sm:$0xff]  ;;  %v119_v18 = vld [vmem:[%s566_s3 + $0x30] sm:$0xff] }
   0x5   :  { %391 = vmatprep.subr.bf16.mxu0 %v429_v0  ;;  %396 = vmatpush3.bf16.msra.mxu1 %v395_v10  ;;  %v401_v17 = vpack.c.bf16 %v118_v16, %v117_v15  ;;  %v120_v19 = vld [vmem:[%s566_s3 + $0x38] sm:$0xff]  ;;  %v203_v21 = vld [vmem:[%s568_s5] sm:$0xff]  ;;  %v204_v22 = vld [vmem:[%s568_s5 + $0x8] sm:$0xff] }
   0x6   :  { %397 = vmatprep.subr.bf16.mxu1 %v429_v0  ;;  %v404_v20 = vpack.c.bf16 %v120_v19, %v119_v18  ;;  %v407_v23 = vpack.c.bf16 %v204_v22, %v203_v21  ;;  %v310_v24 = vld [vmem:[%s569_s2] ss:$0 sm:$0xff]  ;;  %v205_v29 = vld [vmem:[%s568_s5 + $0x10] sm:$0xff]  ;;  %v206_v30 = vld [vmem:[%s568_s5 + $0x18] sm:$0xff] }
   0x7   :  { %v410_v31 = vpack.c.bf16 %v206_v30, %v205_v29  ;;  %v207_v32 = vld [vmem:[%s568_s5 + $0x20] sm:$0xff]  ;;  %v208_v33 = vld [vmem:[%s568_s5 + $0x28] sm:$0xff]  ;;  %v209_v35 = vld [vmem:[%s568_s5 + $0x30] sm:$0xff] }
   0x8   :  { %393 = vmatpush3.bf16.msra.mxu0 %v392_v9  ;;  %v413_v34 = vpack.c.bf16 %v208_v33, %v207_v32  ;;  %v210_v36 = vld [vmem:[%s568_s5 + $0x38] sm:$0xff]  ;;  %v312_v38 = vld [vmem:[%s570_s4] ss:$0 sm:$0xff] }
   0x9   :  { %406 = vmatprep.subr.bf16.mxu0 %v429_v0  ;;  %399 = vmatpush3.bf16.msra.mxu1 %v398_v14  ;;  %v416_v37 = vpack.c.bf16 %v210_v36, %v209_v35  ;;  %v314_v43 = vld [vmem:[%s571_s6] ss:$0 sm:$0xff] }
   0xa   :  { %400 = vmatprep.subr.bf16.mxu1 %v429_v0 }
   0xb   :  { %348 = vmatmul.mubr.msk.f32.vlgmr.msra.gmra.mrb[0].mxu0 %vm38_vm1, %v26_v11 }
   0xc   :  { %385 = vmatprep.mubr.msk.f32.mxu0 %vm430_vm0, %v431_v4  ;;  %408 = vmatpush3.bf16.msra.mxu0 %v407_v23 }
   0xd   :  { %402 = vmatpush3.bf16.msra.mxu1 %v401_v17  ;;  %409 = vmatprep.subr.bf16.mxu0 %v429_v0 }
   0xe   :  { %403 = vmatprep.subr.bf16.mxu1 %v429_v0 }
  0x10   :  { %411 = vmatpush3.bf16.msra.mxu0 %v410_v31 }
  0x11   :  { %405 = vmatpush3.bf16.msra.mxu1 %v404_v20  ;;  %412 = vmatprep.subr.bf16.mxu0 %v429_v0 }
  0x14   :  { %414 = vmatpush3.bf16.msra.mxu0 %v413_v34 }
  0x15   :  { %415 = vmatprep.subr.bf16.mxu0 %v429_v0 }
  0x18   :  { %417 = vmatpush3.bf16.msra.mxu0 %v416_v37 }
  0xde   :  { %v108_v25 = vpop.f32.mrb[0].mxu0 }
  0xdf   :  { %v109_v26 = vadd.f32 %v310_v24, %v108_v25  ;;  %v349_v27 = vpop.f32.mrb[1].mxu0 }
  0xe1   :  { %421 = vtanh.f32 %v109_v26 }
  0xeb   :  { %v422_v28 = vpop.eup %421 }
  0xec   :  { %367 = vmatmul.mubr.msk.f32.vlgmr.msra.gmra.mrb[0].mxu1 %vm128_vm2, %v422_v28 }
 0x1bf   :  { %v198_v39 = vpop.f32.mrb[0].mxu1 }
 0x1c0   :  { %v199_v40 = vadd.f32 %v312_v38, %v198_v39  ;;  %v368_v41 = vpop.f32.mrb[1].mxu1 }
 0x1c2   :  { %423 = vtanh.f32 %v199_v40 }
 0x1cc   :  { %v424_v42 = vpop.eup %423 }
 0x1cd   :  { %386 = vmatmul.mubr.msk.f32.vlgmr.msra.gmra.mrb[2].mxu0 %vm128_vm2, %v424_v42 }
 0x2a0   :  { %v287_v44 = vpop.f32.mrb[2].mxu0 }
 0x2a1   :  { %v288_v45 = vadd.f32 %v314_v43, %v287_v44  ;;  %v387_v46 = vpop.f32.mrb[3].mxu0 }
 0x2a3   :  { %v292_v47 = vsel %vm291_vm3, %v288_v45, -inf }
 0x2a4   :  { %293 = vmax.xlane.f32.xlu0 %v292_v47 }
 0x331   :  { %v294_v48 = vpop.xlane.xlu0 %293 }
 0x332   :  { %v295_v49 = vsub.f32 %v288_v45, %v294_v48 }
 0x334   :  { %v296_v50 = vmul.f32 1.442695, %v295_v49 }
 0x336   :  { %425 = vpow2.f32 %v296_v50 }
 0x340   :  { %v426_v51 = vpop.eup %425 }
 0x341   :  { %v298_v52 = vsel %vm291_vm3, %v426_v51, 0.0 }
 0x342   :  { %299 = vadd.xlane.f32.xlu0 %v298_v52 }
 0x3cf   :  { %v300_v53 = vpop.xlane.xlu0 %299 }
 0x3d0   :  { %427 = vlog2.f32 %v300_v53 }
 0x3da   :  { %v428_v54 = vpop.eup %427 }
 0x3db   :  { %v302_v55 = vmul.f32 0.6931472, %v428_v54 }
 0x3dd   :  { %v303_v56 = vadd.f32 %v302_v55, %v294_v48 }
 0x3df   :  { %v304_v57 = vsub.f32 %v288_v45, %v303_v56 }
 0x3e1   :  { %305 = vst.msk [vmem:[%s572_s7] sm:$0xff] %vm291_vm3, %v304_v57 }

</bundles_post_ra>
